<compile_context>
chip_gen: v7x
topology: tpu7x:2x2x1
jax: 0.10.0
libtpu: 0.0.40
codegen_flags: <defaults>
</compile_context>

<pallas_src>
import functools

import jax
import jax.numpy as jnp
from jax.experimental import pallas as pl
from jax.experimental.pallas import tpu as pltpu


def _round_up(x, m):
    return ((x + m - 1) // m) * m


# ----------------------------------------------------------------------------
# Linear: y = x @ W + b   (x: (M, d_in), W: (d_in, d_out), b: (d_out,))
# ----------------------------------------------------------------------------
def linear_kernel(x_ref, w_ref, b_ref, o_ref):
    y = jnp.dot(x_ref[...], w_ref[...], preferred_element_type=jnp.float32)
    y = y + b_ref[...]                       # (1, d_out) broadcast
    o_ref[...] = y.astype(o_ref.dtype)


def linear(x2d, w, b, *, tm=256):
    M, d_in = x2d.shape
    d_out = w.shape[1]
    tm = min(tm, _round_up(M, 8))            # f32 sublane packing; big tile when M is big
    grid = (pl.cdiv(M, tm),)
    b2d = b.reshape(1, d_out)

    bytes_acc = (M * d_in + d_in * d_out + d_out + M * d_out) * x2d.dtype.itemsize
    cost = pl.CostEstimate(flops=int(2 * M * d_in * d_out),
                           transcendentals=0,
                           bytes_accessed=int(bytes_acc))

    return pl.pallas_call(
        linear_kernel,
        out_shape=jax.ShapeDtypeStruct((M, d_out), x2d.dtype),
        grid_spec=pltpu.PrefetchScalarGridSpec(
            num_scalar_prefetch=0,
            grid=grid,
            in_specs=[
                pl.BlockSpec((tm, d_in), lambda i: (i, 0)),        # x tile
                pl.BlockSpec((d_in, d_out), lambda i: (0, 0)),     # W (resident)
                pl.BlockSpec((1, d_out), lambda i: (0, 0)),        # b (resident)
            ],
            out_specs=pl.BlockSpec((tm, d_out), lambda i: (i, 0)),
        ),
        compiler_params=pltpu.CompilerParams(
            dimension_semantics=("parallel",)),
        cost_estimate=cost,
    )(x2d, w, b2d)


# ----------------------------------------------------------------------------
# Multi-head scaled-dot-product attention, flash-style online softmax.
# Q, K, V: (B, L, D) with heads packed contiguously in D (head h = columns
# [h*Dh, (h+1)*Dh)) -- exactly the layout produced by the projections.
# Output: (B, Lq, D) in the merged-head layout expected by w_out.
# ----------------------------------------------------------------------------
def attn_kernel(q_ref, k_ref, v_ref, o_ref, m_sc, l_sc, acc_sc,
                *, n_head, head_dim, kv_len, tk, scale):
    ki = pl.program_id(2)

    @pl.when(ki == 0)
    def _():
        m_sc[...] = jnp.full(m_sc.shape, -1e30, dtype=m_sc.dtype)
        l_sc[...] = jnp.zeros(l_sc.shape, dtype=l_sc.dtype)
        acc_sc[...] = jnp.zeros(acc_sc.shape, dtype=acc_sc.dtype)

    q = q_ref[0]                                     # (tq, D)  lane-dense load
    k = k_ref[0]                                     # (tk, D)
    v = v_ref[0]                                     # (tk, D)

    need_kv_mask = (kv_len % tk) != 0                # static
    if need_kv_mask:
        kv_ids = ki * tk + jax.lax.broadcasted_iota(jnp.int32, (1, tk), 1)

    # Static (unrolled) loop over heads; each head works on a 32-lane slice.
    for h in range(n_head):
        lo = h * head_dim
        hi = lo + head_dim
        qh = q[:, lo:hi]                             # (tq, Dh)
        kh = k[:, lo:hi]                             # (tk, Dh)
        vh = v[:, lo:hi]                             # (tk, Dh)

        # scores = (Qh @ Kh^T) / sqrt(Dh)   -- f32 accumulation on the MXU
        s = jax.lax.dot_general(qh, kh, (((1,), (1,)), ((), ())),
                                preferred_element_type=jnp.float32) * scale
        if need_kv_mask:                             # mask zero-padded KV rows
            s = jnp.where(kv_ids < kv_len, s, -1e30)

        m_prev = m_sc[h][:, :1]                      # (tq, 1)
        l_prev = l_sc[h][:, :1]                      # (tq, 1)

        m_cur = jnp.max(s, axis=-1, keepdims=True)   # (tq, 1)
        m_new = jnp.maximum(m_prev, m_cur)
        alpha = jnp.exp(m_prev - m_new)              # (tq, 1)
        p = jnp.exp(s - m_new)                       # (tq, tk)
        l_new = alpha * l_prev + jnp.sum(p, axis=-1, keepdims=True)

        acc_sc[h] = acc_sc[h] * alpha + jnp.dot(
            p.astype(vh.dtype), vh, preferred_element_type=jnp.float32)

        m_sc[h] = jnp.broadcast_to(m_new, m_sc.shape[1:])
        l_sc[h] = jnp.broadcast_to(l_new, l_sc.shape[1:])

    @pl.when(ki == pl.num_programs(2) - 1)
    def _():
        outs = []
        for h in range(n_head):
            l_final = l_sc[h][:, :1]                 # (tq, 1)
            outs.append(acc_sc[h] / l_final)         # (tq, Dh)
        # Re-assemble merged-head layout -> single full-width (lane-dense) store.
        o_ref[0] = jnp.concatenate(outs, axis=-1).astype(o_ref.dtype)


def multi_head_sdp_attention(q, k, v, *, n_head, tq=128, tk=128):
    B, Lq, D = q.shape
    Lkv = k.shape[1]
    Dh = D // n_head
    scale = 1.0 / (Dh ** 0.5)

    tq = min(tq, _round_up(Lq, 8))
    tk = min(tk, _round_up(Lkv, 8))

    Lq_p = _round_up(Lq, tq)
    Lkv_p = _round_up(Lkv, tk)
    if Lq_p != Lq:
        q = jnp.pad(q, ((0, 0), (0, Lq_p - Lq), (0, 0)))
    if Lkv_p != Lkv:
        k = jnp.pad(k, ((0, 0), (0, Lkv_p - Lkv), (0, 0)))
        v = jnp.pad(v, ((0, 0), (0, Lkv_p - Lkv), (0, 0)))

    grid = (B, Lq_p // tq, Lkv_p // tk)
    kernel = functools.partial(attn_kernel, n_head=n_head, head_dim=Dh,
                               kv_len=Lkv, tk=tk, scale=scale)

    itemsize = q.dtype.itemsize
    bytes_acc = (2 * B * Lq_p * D + 2 * B * Lkv_p * D) * itemsize
    cost = pl.CostEstimate(flops=int(4 * B * Lq_p * Lkv_p * D),
                           transcendentals=int(B * n_head * Lq_p * Lkv_p),
                           bytes_accessed=int(bytes_acc))

    out = pl.pallas_call(
        kernel,
        out_shape=jax.ShapeDtypeStruct((B, Lq_p, D), q.dtype),
        grid_spec=pltpu.PrefetchScalarGridSpec(
            num_scalar_prefetch=0,
            grid=grid,
            in_specs=[
                pl.BlockSpec((1, tq, D), lambda b, qi, ki: (b, qi, 0)),  # Q
                pl.BlockSpec((1, tk, D), lambda b, qi, ki: (b, ki, 0)),  # K
                pl.BlockSpec((1, tk, D), lambda b, qi, ki: (b, ki, 0)),  # V
            ],
            out_specs=pl.BlockSpec((1, tq, D), lambda b, qi, ki: (b, qi, 0)),
            scratch_shapes=[
                pltpu.VMEM((n_head, tq, 128), jnp.float32),  # running max m (per head)
                pltpu.VMEM((n_head, tq, 128), jnp.float32),  # running denom l (per head)
                pltpu.VMEM((n_head, tq, Dh), jnp.float32),   # f32 output accumulators
            ],
        ),
        compiler_params=pltpu.CompilerParams(
            dimension_semantics=("parallel", "parallel", "arbitrary")),
        cost_estimate=cost,
    )(q, k, v)

    if Lq_p != Lq:
        out = out[:, :Lq, :]
    return out


# ----------------------------------------------------------------------------
# Full MultiHeadAttention forward
# ----------------------------------------------------------------------------
def multi_head_attention(q, k, v, params, *, n_head):
    """q: (B, Lq, D), k/v: (B, Lkv, D). Returns (B, Lq, D)."""
    wq, bq, wk, bk, wv, bv, wo, bo = params
    B, Lq, D = q.shape
    Lkv = k.shape[1]
    assert D % n_head == 0

    Q = linear(q.reshape(B * Lq, D), wq, bq).reshape(B, Lq, D)
    K = linear(k.reshape(B * Lkv, D), wk, bk).reshape(B, Lkv, D)
    V = linear(v.reshape(B * Lkv, D), wv, bv).reshape(B, Lkv, D)

    # Heads are split / merged inside the attention kernel (contiguous D slices),
    # so no transposes are needed here.
    O = multi_head_sdp_attention(Q, K, V, n_head=n_head)     # (B, Lq, D)

    out = linear(O.reshape(B * Lq, D), wo, bo)
    return out.reshape(B, Lq, D)


# ----------------------------------------------------------------------------
# Parameter init (matches nn.Linear shapes; weights stored transposed (in, out))
# ----------------------------------------------------------------------------
def init_params(key, d_model, dtype=jnp.float32):
    keys = jax.random.split(key, 8)
    bound = 1.0 / (d_model ** 0.5)

    def lin(kw, kb):
        w = jax.random.uniform(kw, (d_model, d_model), dtype, -bound, bound)
        b = jax.random.uniform(kb, (d_model,), dtype, -bound, bound)
        return w, b

    wq, bq = lin(keys[0], keys[1])
    wk, bk = lin(keys[2], keys[3])
    wv, bv = lin(keys[4], keys[5])
    wo, bo = lin(keys[6], keys[7])
    return wq, bq, wk, bk, wv, bv, wo, bo


# ----------------------------------------------------------------------------
# Pure-JAX reference
# ----------------------------------------------------------------------------
def mha_reference(q, k, v, params, n_head):
    wq, bq, wk, bk, wv, bv, wo, bo = params
    B, Lq, D = q.shape
    Lkv = k.shape[1]
    Dh = D // n_head
    HI = jax.lax.Precision.HIGHEST

    Q = (jnp.dot(q, wq, precision=HI) + bq).reshape(B, Lq, n_head, Dh).transpose(0, 2, 1, 3)
    K = (jnp.dot(k, wk, precision=HI) + bk).reshape(B, Lkv, n_head, Dh).transpose(0, 2, 1, 3)
    V = (jnp.dot(v, wv, precision=HI) + bv).reshape(B, Lkv, n_head, Dh).transpose(0, 2, 1, 3)

    s = jnp.einsum('bhqd,bhkd->bhqk', Q, K, precision=HI) / (Dh ** 0.5)
    attn = jax.nn.softmax(s, axis=-1)
    O = jnp.einsum('bhqk,bhkd->bhqd', attn, V, precision=HI)
    O = O.transpose(0, 2, 1, 3).reshape(B * Lq, D)
    return (jnp.dot(O, wo, precision=HI) + bo).reshape(B, Lq, D)


if __name__ == "__main__":
    key = jax.random.PRNGKey(0)
    batch, seq, d_model, n_head = 2, 8, 128, 4

    kq, kk, kv_, kp = jax.random.split(key, 4)
    q = jax.random.normal(kq, (batch, seq, d_model), jnp.float32)
    k = jax.random.normal(kk, (batch, seq, d_model), jnp.float32)
    v = jax.random.normal(kv_, (batch, seq, d_model), jnp.float32)
    params = init_params(kp, d_model)

    out = multi_head_attention(q, k, v, params, n_head=n_head)
    out = jax.block_until_ready(out)

    ref = mha_reference(q, k, v, params, n_head)
    assert out.shape == (batch, seq, d_model)
    max_err = float(jnp.max(jnp.abs(out - ref)))
    # tolerance covers MXU f32-via-bf16-pass matmul precision differences
    assert jnp.allclose(out, ref, atol=2e-3, rtol=2e-3), \
        f"mismatch vs reference, max abs err {max_err}"

    print("KERNEL_OK")
</pallas_src>

<mosaic_0001>
module attributes {stable_mosaic.version = 11 : i64} {
  func.func @linear_kernel(%arg0: i32, %arg1: memref<16x128xf32, #tpu.memory_space<vmem>>, %arg2: memref<128x128xf32, #tpu.memory_space<vmem>>, %arg3: memref<1x128xf32, #tpu.memory_space<vmem>>, %arg4: memref<16x128xf32, #tpu.memory_space<vmem>>) attributes {dimension_semantics = [#tpu.dimension_semantics<parallel>], iteration_bounds = array<i64: 1>, scalar_prefetch = 0 : i64, scratch_operands = 0 : i64, tpu.core_type = #tpu.core_type<tc>, window_params = [{transform_indices = @transform_0, window_bounds = array<i64: 16, 128>}, {pipeline_mode = #tpu.pipeline_mode<synchronous>, transform_indices = @transform_1, window_bounds = array<i64: 128, 128>}, {pipeline_mode = #tpu.pipeline_mode<synchronous>, transform_indices = @transform_2, window_bounds = array<i64: 1, 128>}, {transform_indices = @transform_3, window_bounds = array<i64: 16, 128>}]} {
    %c0 = arith.constant 0 : index
    %c0_0 = arith.constant 0 : index
    %0 = vector.load %arg1[%c0, %c0_0] : memref<16x128xf32, #tpu.memory_space<vmem>>, vector<16x128xf32>
    %c0_1 = arith.constant 0 : index
    %c0_2 = arith.constant 0 : index
    %1 = vector.load %arg2[%c0_1, %c0_2] : memref<128x128xf32, #tpu.memory_space<vmem>>, vector<128x128xf32>
    %cst = arith.constant dense<0.000000e+00> : vector<16x128xf32>
    %2 = tpu.matmul %0, %1, %cst {dimension_numbers = #tpu.dot_dimension_numbers<[1], [0], [0], [1], [0, 0, 1, 1], [], []>} : vector<16x128xf32>, vector<128x128xf32>, vector<16x128xf32> -> vector<16x128xf32>
    %c0_3 = arith.constant 0 : index
    %c0_4 = arith.constant 0 : index
    %3 = vector.load %arg3[%c0_3, %c0_4] : memref<1x128xf32, #tpu.memory_space<vmem>>, vector<1x128xf32>
    %4 = vector.broadcast %3 : vector<1x128xf32> to vector<16x128xf32>
    %5 = arith.addf %2, %4 : vector<16x128xf32>
    %c0_5 = arith.constant 0 : index
    %c0_6 = arith.constant 0 : index
    %6 = vector.load %arg4[%c0_5, %c0_6] : memref<16x128xf32, #tpu.memory_space<vmem>>, vector<16x128xf32>
    tpu.vector_store %arg4[%c0_5, %c0_6], %5 {strides = array<i32>} : memref<16x128xf32, #tpu.memory_space<vmem>>, vector<16x128xf32>,
    return
  }
  func.func @transform_0(%arg0: i32) -> (i32, i32) {
    %c0_i32 = arith.constant 0 : i32
    %c0_i32_0 = arith.constant 0 : i32
    return %arg0, %c0_i32 : i32, i32
  }
  func.func @transform_1(%arg0: i32) -> (i32, i32) {
    %c0_i32 = arith.constant 0 : i32
    %c0_i32_0 = arith.constant 0 : i32
    %c0_i32_1 = arith.constant 0 : i32
    return %c0_i32, %c0_i32_0 : i32, i32
  }
  func.func @transform_2(%arg0: i32) -> (i32, i32) {
    %c0_i32 = arith.constant 0 : i32
    %c0_i32_0 = arith.constant 0 : i32
    %c0_i32_1 = arith.constant 0 : i32
    return %c0_i32, %c0_i32_0 : i32, i32
  }
  func.func @transform_3(%arg0: i32) -> (i32, i32) {
    %c0_i32 = arith.constant 0 : i32
    %c0_i32_0 = arith.constant 0 : i32
    return %arg0, %c0_i32 : i32, i32
  }
}

</mosaic_0001>

<bundles_post_ra>
// kernel: tpu_custom_call.1
= control target key start
LH: loop header
LB: loop body
LE: loop exit
PB: predicated region body
PF: predicated region fallthrough
CT: control target
= control target key end

     0   :  { %8 = vsyncpa [#allocation3], 0  ;;  %s399_s0 = inlined_call_operand.hbm [shape: f32[16,128], index: 0, kind: input, shape index: {}]   ;;  %s400_s1 = inlined_call_operand.hbm [shape: f32[128,128], index: 1, kind: input, shape index: {}]   ;;  %s401_s2 = inlined_call_operand.vmem [shape: f32[1,128], index: 2, kind: input, shape index: {}]   ;;  %s402_s3 = inlined_call_operand.hbm [shape: f32[16,128], index: 3, kind: output, shape index: {}]  }
   0x1   :  { %9 = vsyncpa [#allocation6], 0 }
   0x2   :  { %10 = vsyncpa [#allocation4], 0  ;;  %s326_s12 = smov [#allocation2]   ;;  %s254_s16 = scalar_lea.hbm %s399_s0, 256 }
   0x3   :  { %s16_s13 = sshll.u32 %s326_s12, 4  ;;  %p255_p0 = scmp.ne.s32.totalorder %s399_s0, %s254_s16  ;;  %s17_s13 = int_to_ptr.vmem [resolvable:$true] %s16_s13 }
   0x4   :  { %p258_p1 = scmp.lt.u32.totalorder %s254_s16, %s399_s0 }
   0x6   :  { %p260_p2 = pnand %p258_p1, %p255_p0 }
   0x8   :  { %263 = shalt.err (!%p260_p2)
}
   0x9   :  { %s264_s21 = scalar_lea.vmem %s17_s13, 256  ;;  %p269_p4 = scmp.lt.s32.totalorder %s17_s13, %s17_s13 }
   0xa   :  { %p265_p3 = scmp.ne.s32.totalorder %s17_s13, %s264_s21  ;;  %p270_p5 = scmp.lt.s32.totalorder %s264_s21, %s264_s21 }
   0xc   :  { %p271_p6 = por %p270_p5, %p269_p4 }
   0xe   :  { %p272_p7 = pnand %p271_p6, %p265_p3 }
  0x10   :  { %275 = shalt.err (!%p272_p7)
}
  0x11   :  { %s327_s22 = smov 128   ;;  %s328_s23 = smov 8  }
  0x12   :  { %22 = dma.hbm_to_vmem [thread:$0]  %s399_s0, 256, %s17_s13, [#allocation3], %s327_s22, %s327_s22, %s328_s23  }
  0x13   :  { %s329_s26 = smov [#allocation5]   ;;  %s276_s30 = scalar_lea.hbm %s400_s1, 2048 }
  0x14   :  { %s28_s27 = sshll.u32 %s329_s26, 4  ;;  %p277_p8 = scmp.ne.s32.totalorder %s400_s1, %s276_s30  ;;  %s29_s27 = int_to_ptr.vmem [resolvable:$true] %s28_s27 }
  0x15   :  { %p280_p9 = scmp.lt.u32.totalorder %s276_s30, %s400_s1 }
  0x17   :  { %p282_p10 = pnand %p280_p9, %p277_p8 }
  0x19   :  { %285 = shalt.err (!%p282_p10)
}
  0x1a   :  { %s286_s8 = scalar_lea.vmem %s29_s27, 2048  ;;  %p291_p12 = scmp.lt.s32.totalorder %s29_s27, %s29_s27 }
  0x1b   :  { %p287_p11 = scmp.ne.s32.totalorder %s29_s27, %s286_s8  ;;  %p292_p13 = scmp.lt.s32.totalorder %s286_s8, %s286_s8 }
  0x1d   :  { %p293_p0 = por %p292_p13, %p291_p12 }
  0x1f   :  { %p294_p1 = pnand %p293_p0, %p287_p11 }
  0x21   :  { %297 = shalt.err (!%p294_p1)
}
  0x22   :  { %34 = dma.hbm_to_vmem [thread:$0]  %s400_s1, 2048, %s29_s27, [#allocation6], %s327_s22, %s327_s22, %s328_s23  }
  0x23   :  { %320 = dma.done.wait [#allocation3], 256  }
  0x24   :  { %321 = vsyncadd [#allocation3], 4294967040 }
  0x25   :  { %322 = dma.done.wait [#allocation6], 2048  }
  0x26   :  { %323 = vsyncadd [#allocation6], 4294965248  ;;  %v45_v0 = vld [vmem:[#allocation5] sm:$0xff]  ;;  %v46_v1 = vld [vmem:[#allocation5 + $0x8] sm:$0xff]  ;;  %s330_s11 = smov [#allocation7]  }
  0x27   :  { %v47_v2 = vld [vmem:[#allocation5 + $0x10] sm:$0xff]  ;;  %v217_v3 = vpack.c.bf16 %v46_v1, %v45_v0  ;;  %v48_v4 = vld [vmem:[#allocation5 + $0x18] sm:$0xff]  ;;  %v49_v6 = vld [vmem:[#allocation5 + $0x20] sm:$0xff]  ;;  %s150_s12 = sshll.u32 %s330_s11, 4  ;;  %s151_s12 = int_to_ptr.vmem [resolvable:$true] %s150_s12 }
  0x28   :  { %v221_v5 = vpack.c.bf16 %v48_v4, %v47_v2  ;;  %v50_v7 = vld [vmem:[#allocation5 + $0x28] sm:$0xff]  ;;  %v43_v9 = vld [vmem:[#allocation2] sm:$0xff]  ;;  %v52_v11 = vld [vmem:[#allocation5 + $0x38] sm:$0xff]  ;;  %s298_s13 = scalar_lea.vmem %s151_s12, 256  ;;  %p303_p3 = scmp.lt.s32.totalorder %s151_s12, %s151_s12 }
  0x29   :  { %218 = vmatprep.subr.bf16.mxu0 %v217_v3  ;;  %v225_v8 = vpack.c.bf16 %v50_v7, %v49_v6  ;;  %v51_v10 = vld [vmem:[#allocation5 + $0x30] sm:$0xff]  ;;  %214 = vmatprep.mubr.f32.mxu0 %v43_v9  ;;  %v53_v13 = vld [vmem:[#allocation5 + $0x40] sm:$0xff]  ;;  %v54_v14 = vld [vmem:[#allocation5 + $0x48] sm:$0xff]  ;;  %p299_p2 = scmp.ne.s32.totalorder %s151_s12, %s298_s13  ;;  %p304_p4 = scmp.lt.s32.totalorder %s298_s13, %s298_s13 }
  0x2a   :  { %220 = vmatpush3.bf16.msra.mxu0 %v217_v3  ;;  %v229_v12 = vpack.c.bf16 %v52_v11, %v51_v10  ;;  %v233_v15 = vpack.c.bf16 %v54_v14, %v53_v13  ;;  %v55_v16 = vld [vmem:[#allocation5 + $0x50] sm:$0xff]  ;;  %v56_v17 = vld [vmem:[#allocation5 + $0x58] sm:$0xff]  ;;  %v57_v19 = vld [vmem:[#allocation5 + $0x60] sm:$0xff] }
  0x2b   :  { %222 = vmatprep.subr.bf16.mxu0 %v221_v5  ;;  %v237_v18 = vpack.c.bf16 %v56_v17, %v55_v16  ;;  %v58_v20 = vld [vmem:[#allocation5 + $0x68] sm:$0xff]  ;;  %v59_v22 = vld [vmem:[#allocation5 + $0x70] sm:$0xff]  ;;  %v60_v23 = vld [vmem:[#allocation5 + $0x78] sm:$0xff]  ;;  %p305_p5 = por %p304_p4, %p303_p3 }
  0x2c   :  { %v241_v21 = vpack.c.bf16 %v58_v20, %v57_v19  ;;  %v245_v24 = vpack.c.bf16 %v60_v23, %v59_v22  ;;  %v44_v25 = vld [vmem:[#allocation2 + $0x8] sm:$0xff]  ;;  %v163_v26 = vld [vmem:[%s401_s2] ss:$0 sm:$0xff] }
  0x2d   :  { %p306_p6 = pnand %p305_p5, %p299_p2 }
  0x2e   :  { %224 = vmatpush3.bf16.msra.mxu0 %v221_v5 }
  0x2f   :  { %226 = vmatprep.subr.bf16.mxu0 %v225_v8 }
  0x32   :  { %228 = vmatpush3.bf16.msra.mxu0 %v225_v8 }
  0x33   :  { %230 = vmatprep.subr.bf16.mxu0 %v229_v12 }
  0x36   :  { %232 = vmatpush3.bf16.msra.mxu0 %v229_v12 }
  0x37   :  { %234 = vmatprep.subr.bf16.mxu0 %v233_v15 }
  0x3a   :  { %236 = vmatpush3.bf16.msra.mxu0 %v233_v15 }
  0x3b   :  { %238 = vmatprep.subr.bf16.mxu0 %v237_v18 }
  0x3e   :  { %240 = vmatpush3.bf16.msra.mxu0 %v237_v18 }
  0x3f   :  { %242 = vmatprep.subr.bf16.mxu0 %v241_v21 }
  0x42   :  { %244 = vmatpush3.bf16.msra.mxu0 %v241_v21 }
  0x43   :  { %246 = vmatprep.subr.bf16.mxu0 %v245_v24 }
  0x46   :  { %248 = vmatpush3.bf16.msra.mxu0 %v245_v24 }
  0x49   :  { %215 = vmatmul.mubr.f32.vlgmr.msra.gmra.mrb[0].mxu0 %v44_v25 }
 0x11c   :  { %v216_v27 = vpop.f32.mrb[0].mxu0 }
 0x11d   :  { %v140_v28 = vadd.f32 %v216_v27, %v163_v26  ;;  %v134_v29 = vpop.f32.mrb[1].mxu0 }
 0x11e   :  { %v135_v30 = vadd.f32 %v163_v26, %v134_v29 }
 0x11f   :  { %144 = vst [vmem:[#allocation7 + $0x8] sm:$0xff] %v140_v28 }
 0x120   :  { %143 = vst [vmem:[#allocation7] sm:$0xff] %v135_v30 }
 0x121   :  { %309 = shalt.err (!%p306_p6)
}
 0x122   :  { %s310_s2 = scalar_lea.hbm %s402_s3, 256 }
 0x123   :  { %p311_p7 = scmp.ne.s32.totalorder %s402_s3, %s310_s2  ;;  %p314_p8 = scmp.lt.u32.totalorder %s310_s2, %s402_s3 }
 0x125   :  { %p316_p9 = pnand %p314_p8, %p311_p7 }
 0x127   :  { %319 = shalt.err (!%p316_p9)
}
 0x128   :  { %156 = dma.vmem_to_hbm [thread:$0]  %s151_s12, 256, %s402_s3, [#allocation4], %s327_s22, %s327_s22, %s328_s23  }
 0x129   :  { %324 = dma.done.wait [#allocation4], 256  }
 0x12a   :  { %325 = vsyncadd [#allocation4], 4294967040 }
 0x12b   :  { %160 = vsyncpa [#allocation3], 1 }
 0x12c   :  { %161 = vsyncpa [#allocation6], 1 }
 0x12d   :  { %162 = vsyncpa [#allocation4], 1 }

</bundles_post_ra>
